<compile_context>
chip_gen: v5e
topology: v5e:2x2
jax: 0.10.0
libtpu: 0.0.40
codegen_flags: <defaults>
</compile_context>

<pallas_src>
import math
import functools

import jax
import jax.numpy as jnp
from jax import lax
from jax.experimental import pallas as pl
from jax.experimental.pallas import tpu as pltpu


def _dac_att_kernel(norm_factor, n_heads, key_dim, val_dim,
                    hn_ref, hp_ref, wn_ref, wp_ref, wo_ref, out_ref):
    """One grid step = one batch element; all heads handled in-line."""
    hn = hn_ref[0]            # (N, D)
    hp = hp_ref[0]            # (N, D)

    dot = functools.partial(jnp.dot, preferred_element_type=jnp.float32)

    # Fused QKV projections: columns are [Q | K | V0 | V1], each head-major.
    proj_n = dot(hn, wn_ref[...])        # (N, 2*H*kd + 2*H*vd) = (N, 128)
    proj_p = dot(hp, wp_ref[...])        # (N, 128)

    HK = n_heads * key_dim
    HV = n_heads * val_dim
    off_k = HK
    off_v0 = 2 * HK
    off_v1 = 2 * HK + HV

    contract_last = (((1,), (1,)), ((), ()))

    node_parts = []
    pos_parts = []
    for h in range(n_heads):              # unrolled, n_heads is small & static
        qn = proj_n[:, h * key_dim:(h + 1) * key_dim]
        kn = proj_n[:, off_k + h * key_dim: off_k + (h + 1) * key_dim]
        vn0 = proj_n[:, off_v0 + h * val_dim: off_v0 + (h + 1) * val_dim]
        vn1 = proj_n[:, off_v1 + h * val_dim: off_v1 + (h + 1) * val_dim]

        qp = proj_p[:, h * key_dim:(h + 1) * key_dim]
        kp = proj_p[:, off_k + h * key_dim: off_k + (h + 1) * key_dim]
        vp0 = proj_p[:, off_v0 + h * val_dim: off_v0 + (h + 1) * val_dim]
        vp1 = proj_p[:, off_v1 + h * val_dim: off_v1 + (h + 1) * val_dim]

        # scaled correlations (contract last dims directly -- no k.T)
        s1 = norm_factor * lax.dot_general(
            qn, kn, contract_last, preferred_element_type=jnp.float32)  # (N, N)
        s2 = norm_factor * lax.dot_general(
            qp, kp, contract_last, preferred_element_type=jnp.float32)  # (N, N)

        # numerically stable softmax; reciprocal on the EUP slot
        a1 = jnp.exp(s1 - jnp.max(s1, axis=-1, keepdims=True))
        a1 = a1 * pl.reciprocal(jnp.sum(a1, axis=-1, keepdims=True), approx=True)
        a2 = jnp.exp(s2 - jnp.max(s2, axis=-1, keepdims=True))
        a2 = a2 * pl.reciprocal(jnp.sum(a2, axis=-1, keepdims=True), approx=True)

        # per-head heads, ordered exactly like the reference concat/permute
        node_parts += [dot(a1, vn0), dot(a2, vn1)]
        pos_parts += [dot(a1, vp0), dot(a2, vp1)]

    # Lane-dense (N, 2*H*2*vd) = (N, 128) operand; one matmul against the
    # block-diagonal [W_out_node ; W_out_pos] gives the fused (N, 2E) output.
    heads_all = jnp.concatenate(node_parts + pos_parts, axis=-1)
    out_ref[0] = dot(heads_all, wo_ref[...]).astype(out_ref.dtype)


def _fuse_qkv(wq, wk, wv, n_heads):
    """(H,D,kd)+(H,D,kd)+(2H,D,vd) -> single (D, H*(2kd+2vd)) lane-dense weight."""
    D = wq.shape[1]

    def flat(w):  # (H, D, d) -> (D, H*d), head-major columns
        return jnp.transpose(w, (1, 0, 2)).reshape(D, -1)

    return jnp.concatenate(
        [flat(wq), flat(wk), flat(wv[:n_heads]), flat(wv[n_heads:])], axis=-1)


def dac_att_forward(h_node, h_pos, params, n_heads):
    wqn, wqp, wkn, wkp, wvn, wvp, won, wop = params
    B, N, D = h_node.shape
    kd = wqn.shape[-1]
    vd = wvn.shape[-1]
    E = won.shape[-1]
    norm_factor = 1.0 / math.sqrt(kd)

    # Host-side weight fusion (done once per call; cheap & XLA-fused).
    wn_fused = _fuse_qkv(wqn, wkn, wvn, n_heads)    # (D, 2*H*kd + 2*H*vd)
    wp_fused = _fuse_qkv(wqp, wkp, wvp, n_heads)    # (D, 2*H*kd + 2*H*vd)

    won_flat = won.reshape(n_heads * 2 * kd, E)     # (H*2*kd, E)
    wop_flat = wop.reshape(n_heads * 2 * kd, E)
    R = won_flat.shape[0]
    wo_bd = jnp.zeros((2 * R, 2 * E), won.dtype)
    wo_bd = wo_bd.at[:R, :E].set(won_flat).at[R:, E:].set(wop_flat)  # block-diag

    kernel = functools.partial(_dac_att_kernel, norm_factor, n_heads, kd, vd)

    out_fused = pl.pallas_call(
        kernel,
        out_shape=jax.ShapeDtypeStruct((B, N, 2 * E), jnp.float32),
        grid=(B,),
        in_specs=[
            pl.BlockSpec((1, N, D), lambda b: (b, 0, 0)),
            pl.BlockSpec((1, N, D), lambda b: (b, 0, 0)),
            pl.BlockSpec(wn_fused.shape, lambda b: (0, 0)),
            pl.BlockSpec(wp_fused.shape, lambda b: (0, 0)),
            pl.BlockSpec(wo_bd.shape, lambda b: (0, 0)),
        ],
        out_specs=pl.BlockSpec((1, N, 2 * E), lambda b: (b, 0, 0)),
        compiler_params=pltpu.CompilerParams(
            dimension_semantics=("parallel",)),
    )(h_node, h_pos, wn_fused, wp_fused, wo_bd)

    # split fused (node || pos) output
    return out_fused[..., :E], out_fused[..., E:]


def dac_att_reference(h_node_in, h_pos_in, params, n_heads):
    """Pure-JAX transcription of the PyTorch forward, for validation."""
    wqn, wqp, wkn, wkp, wvn, wvp, won, wop = params
    B, N, D = h_node_in.shape
    kd = wqn.shape[-1]
    vd = wvn.shape[-1]
    E = won.shape[-1]
    norm = 1.0 / math.sqrt(kd)

    hn = h_node_in.reshape(-1, D)
    hp = h_pos_in.reshape(-1, D)
    shp = (n_heads, B, N, -1)
    shp_v = (2, n_heads, B, N, -1)

    Qn = jnp.matmul(hn, wqn).reshape(shp)
    Qp = jnp.matmul(hp, wqp).reshape(shp)
    Kn = jnp.matmul(hn, wkn).reshape(shp)
    Kp = jnp.matmul(hp, wkp).reshape(shp)
    Vn = jnp.matmul(hn, wvn).reshape(shp_v)
    Vp = jnp.matmul(hp, wvp).reshape(shp_v)

    node_corr = norm * jnp.matmul(Qn, jnp.swapaxes(Kn, 2, 3))
    pos_corr = norm * jnp.matmul(Qp, jnp.swapaxes(Kp, 2, 3))
    attn1 = jax.nn.softmax(node_corr, axis=-1)
    attn2 = jax.nn.softmax(pos_corr, axis=-1)

    hn1 = jnp.matmul(attn1, Vn[0])
    hn2 = jnp.matmul(attn2, Vn[1])
    hp1 = jnp.matmul(attn1, Vp[0])
    hp2 = jnp.matmul(attn2, Vp[1])
    heads_node = jnp.concatenate([hn1, hn2], -1)
    heads_pos = jnp.concatenate([hp1, hp2], -1)

    out_node = jnp.matmul(
        heads_node.transpose(1, 2, 0, 3).reshape(-1, n_heads * 2 * vd),
        won.reshape(-1, E)).reshape(B, N, E)
    out_pos = jnp.matmul(
        heads_pos.transpose(1, 2, 0, 3).reshape(-1, n_heads * 2 * vd),
        wop.reshape(-1, E)).reshape(B, N, E)
    return out_node, out_pos


def init_params(key, n_heads, input_dim, embed_dim):
    """Deterministic init mirroring DAC_ATT.init_parameters (uniform ±1/sqrt(last dim))."""
    kd = vd = embed_dim // n_heads
    shapes = [
        ("W_query_node", (n_heads, input_dim, kd)),
        ("W_query_pos", (n_heads, input_dim, kd)),
        ("W_key_node", (n_heads, input_dim, kd)),
        ("W_key_pos", (n_heads, input_dim, kd)),
        ("W_val_node", (2 * n_heads, input_dim, vd)),
        ("W_val_pos", (2 * n_heads, input_dim, vd)),
        ("W_out_node", (n_heads, 2 * kd, embed_dim)),
        ("W_out_pos", (n_heads, 2 * kd, embed_dim)),
    ]
    params = []
    keys = jax.random.split(key, len(shapes))
    for k, (_, shp) in zip(keys, shapes):
        stdv = 1.0 / math.sqrt(shp[-1])
        params.append(jax.random.uniform(k, shp, jnp.float32, -stdv, stdv))
    return tuple(params)


if __name__ == "__main__":
    B, N = 2, 8                 # batch, graph_size
    input_dim = 32
    embed_dim = 32
    n_heads = 4                 # key_dim = val_dim = 8

    root = jax.random.PRNGKey(0)
    k_p, k_n, k_q = jax.random.split(root, 3)
    params = init_params(k_p, n_heads, input_dim, embed_dim)
    h_node_in = jax.random.normal(k_n, (B, N, input_dim), jnp.float32)
    h_pos_in = jax.random.normal(k_q, (B, N, input_dim), jnp.float32)

    out_node, out_pos = dac_att_forward(h_node_in, h_pos_in, params, n_heads)
    jax.block_until_ready((out_node, out_pos))

    ref_node, ref_pos = dac_att_reference(h_node_in, h_pos_in, params, n_heads)
    assert out_node.shape == (B, N, embed_dim) and out_pos.shape == (B, N, embed_dim)
    # tolerance slightly loosened for the approx (EUP) reciprocal in the softmax
    assert jnp.allclose(out_node, ref_node, rtol=5e-3, atol=5e-3)
    assert jnp.allclose(out_pos, ref_pos, rtol=5e-3, atol=5e-3)

    print("KERNEL_OK")
</pallas_src>

<mosaic_0001>
module attributes {stable_mosaic.version = 11 : i64} {
  func.func @_dac_att_kernel(%arg0: i32, %arg1: memref<1x8x32xf32, #tpu.memory_space<vmem>>, %arg2: memref<1x8x32xf32, #tpu.memory_space<vmem>>, %arg3: memref<32x128xf32, #tpu.memory_space<vmem>>, %arg4: memref<32x128xf32, #tpu.memory_space<vmem>>, %arg5: memref<128x64xf32, #tpu.memory_space<vmem>>, %arg6: memref<1x8x64xf32, #tpu.memory_space<vmem>>) attributes {dimension_semantics = [#tpu.dimension_semantics<parallel>], iteration_bounds = array<i64: 2>, scalar_prefetch = 0 : i64, scratch_operands = 0 : i64, tpu.core_type = #tpu.core_type<tc>, window_params = [{transform_indices = @transform_0, window_bounds = array<i64: 1, 8, 32>}, {transform_indices = @transform_1, window_bounds = array<i64: 1, 8, 32>}, {pipeline_mode = #tpu.pipeline_mode<synchronous>, transform_indices = @transform_2, window_bounds = array<i64: 32, 128>}, {pipeline_mode = #tpu.pipeline_mode<synchronous>, transform_indices = @transform_3, window_bounds = array<i64: 32, 128>}, {pipeline_mode = #tpu.pipeline_mode<synchronous>, transform_indices = @transform_4, window_bounds = array<i64: 128, 64>}, {transform_indices = @transform_5, window_bounds = array<i64: 1, 8, 64>}]} {
    %c0 = arith.constant 0 : index
    %c0_0 = arith.constant 0 : index
    %c0_1 = arith.constant 0 : index
    %0 = vector.load %arg1[%c0, %c0_0, %c0_1] : memref<1x8x32xf32, #tpu.memory_space<vmem>>, vector<1x8x32xf32>
    %1 = vector.shape_cast %0 : vector<1x8x32xf32> to vector<8x32xf32>
    %c0_2 = arith.constant 0 : index
    %c0_3 = arith.constant 0 : index
    %c0_4 = arith.constant 0 : index
    %2 = vector.load %arg2[%c0_2, %c0_3, %c0_4] : memref<1x8x32xf32, #tpu.memory_space<vmem>>, vector<1x8x32xf32>
    %3 = vector.shape_cast %2 : vector<1x8x32xf32> to vector<8x32xf32>
    %c0_5 = arith.constant 0 : index
    %c0_6 = arith.constant 0 : index
    %4 = vector.load %arg3[%c0_5, %c0_6] : memref<32x128xf32, #tpu.memory_space<vmem>>, vector<32x128xf32>
    %cst = arith.constant dense<0.000000e+00> : vector<8x128xf32>
    %5 = tpu.matmul %1, %4, %cst {dimension_numbers = #tpu.dot_dimension_numbers<[1], [0], [0], [1], [0, 0, 1, 1], [], []>} : vector<8x32xf32>, vector<32x128xf32>, vector<8x128xf32> -> vector<8x128xf32>
    %c0_7 = arith.constant 0 : index
    %c0_8 = arith.constant 0 : index
    %6 = vector.load %arg4[%c0_7, %c0_8] : memref<32x128xf32, #tpu.memory_space<vmem>>, vector<32x128xf32>
    %cst_9 = arith.constant dense<0.000000e+00> : vector<8x128xf32>
    %7 = tpu.matmul %3, %6, %cst_9 {dimension_numbers = #tpu.dot_dimension_numbers<[1], [0], [0], [1], [0, 0, 1, 1], [], []>} : vector<8x32xf32>, vector<32x128xf32>, vector<8x128xf32> -> vector<8x128xf32>
    %8 = vector.extract_strided_slice %5 {offsets = [0, 0], sizes = [8, 8], strides = [1, 1]} : vector<8x128xf32> to vector<8x8xf32>
    %9 = vector.extract_strided_slice %5 {offsets = [0, 32], sizes = [8, 8], strides = [1, 1]} : vector<8x128xf32> to vector<8x8xf32>
    %10 = vector.extract_strided_slice %5 {offsets = [0, 64], sizes = [8, 8], strides = [1, 1]} : vector<8x128xf32> to vector<8x8xf32>
    %11 = vector.extract_strided_slice %5 {offsets = [0, 96], sizes = [8, 8], strides = [1, 1]} : vector<8x128xf32> to vector<8x8xf32>
    %12 = vector.extract_strided_slice %7 {offsets = [0, 0], sizes = [8, 8], strides = [1, 1]} : vector<8x128xf32> to vector<8x8xf32>
    %13 = vector.extract_strided_slice %7 {offsets = [0, 32], sizes = [8, 8], strides = [1, 1]} : vector<8x128xf32> to vector<8x8xf32>
    %14 = vector.extract_strided_slice %7 {offsets = [0, 64], sizes = [8, 8], strides = [1, 1]} : vector<8x128xf32> to vector<8x8xf32>
    %15 = vector.extract_strided_slice %7 {offsets = [0, 96], sizes = [8, 8], strides = [1, 1]} : vector<8x128xf32> to vector<8x8xf32>
    %cst_10 = arith.constant dense<0.000000e+00> : vector<8x8xf32>
    %16 = tpu.matmul %8, %9, %cst_10 {dimension_numbers = #tpu.dot_dimension_numbers<[1], [1], [0], [0], [0, 0, 1, 0], [], []>} : vector<8x8xf32>, vector<8x8xf32>, vector<8x8xf32> -> vector<8x8xf32>
    %cst_11 = arith.constant 0.353553385 : f32
    %17 = vector.broadcast %cst_11 : f32 to vector<8x8xf32>
    %18 = arith.mulf %17, %16 : vector<8x8xf32>
    %cst_12 = arith.constant dense<0.000000e+00> : vector<8x8xf32>
    %19 = tpu.matmul %12, %13, %cst_12 {dimension_numbers = #tpu.dot_dimension_numbers<[1], [1], [0], [0], [0, 0, 1, 0], [], []>} : vector<8x8xf32>, vector<8x8xf32>, vector<8x8xf32> -> vector<8x8xf32>
    %cst_13 = arith.constant 0.353553385 : f32
    %20 = vector.broadcast %cst_13 : f32 to vector<8x8xf32>
    %21 = arith.mulf %20, %19 : vector<8x8xf32>
    %cst_14 = arith.constant dense<0xFF800000> : vector<8xf32>
    %22 = vector.multi_reduction <maximumf>, %18, %cst_14 [1] : vector<8x8xf32> to vector<8xf32>
    %23 = vector.shape_cast %22 : vector<8xf32> to vector<8x1xf32>
    %24 = vector.broadcast %23 : vector<8x1xf32> to vector<8x8xf32>
    %25 = arith.subf %18, %24 : vector<8x8xf32>
    %26 = math.exp %25 : vector<8x8xf32>
    %cst_15 = arith.constant dense<0.000000e+00> : vector<8xf32>
    %27 = vector.multi_reduction <add>, %26, %cst_15 [1] : vector<8x8xf32> to vector<8xf32>
    %28 = vector.shape_cast %27 : vector<8xf32> to vector<8x1xf32>
    %29 = tpu.reciprocal %28 {approx = true} : vector<8x1xf32> -> vector<8x1xf32>
    %30 = vector.broadcast %29 : vector<8x1xf32> to vector<8x8xf32>
    %31 = arith.mulf %26, %30 : vector<8x8xf32>
    %cst_16 = arith.constant dense<0xFF800000> : vector<8xf32>
    %32 = vector.multi_reduction <maximumf>, %21, %cst_16 [1] : vector<8x8xf32> to vector<8xf32>
    %33 = vector.shape_cast %32 : vector<8xf32> to vector<8x1xf32>
    %34 = vector.broadcast %33 : vector<8x1xf32> to vector<8x8xf32>
    %35 = arith.subf %21, %34 : vector<8x8xf32>
    %36 = math.exp %35 : vector<8x8xf32>
    %cst_17 = arith.constant dense<0.000000e+00> : vector<8xf32>
    %37 = vector.multi_reduction <add>, %36, %cst_17 [1] : vector<8x8xf32> to vector<8xf32>
    %38 = vector.shape_cast %37 : vector<8xf32> to vector<8x1xf32>
    %39 = tpu.reciprocal %38 {approx = true} : vector<8x1xf32> -> vector<8x1xf32>
    %40 = vector.broadcast %39 : vector<8x1xf32> to vector<8x8xf32>
    %41 = arith.mulf %36, %40 : vector<8x8xf32>
    %cst_18 = arith.constant dense<0.000000e+00> : vector<8x8xf32>
    %42 = tpu.matmul %31, %10, %cst_18 {dimension_numbers = #tpu.dot_dimension_numbers<[1], [0], [0], [1], [0, 0, 1, 1], [], []>} : vector<8x8xf32>, vector<8x8xf32>, vector<8x8xf32> -> vector<8x8xf32>
    %cst_19 = arith.constant dense<0.000000e+00> : vector<8x8xf32>
    %43 = tpu.matmul %41, %11, %cst_19 {dimension_numbers = #tpu.dot_dimension_numbers<[1], [0], [0], [1], [0, 0, 1, 1], [], []>} : vector<8x8xf32>, vector<8x8xf32>, vector<8x8xf32> -> vector<8x8xf32>
    %cst_20 = arith.constant dense<0.000000e+00> : vector<8x8xf32>
    %44 = tpu.matmul %31, %14, %cst_20 {dimension_numbers = #tpu.dot_dimension_numbers<[1], [0], [0], [1], [0, 0, 1, 1], [], []>} : vector<8x8xf32>, vector<8x8xf32>, vector<8x8xf32> -> vector<8x8xf32>
    %cst_21 = arith.constant dense<0.000000e+00> : vector<8x8xf32>
    %45 = tpu.matmul %41, %15, %cst_21 {dimension_numbers = #tpu.dot_dimension_numbers<[1], [0], [0], [1], [0, 0, 1, 1], [], []>} : vector<8x8xf32>, vector<8x8xf32>, vector<8x8xf32> -> vector<8x8xf32>
    %46 = vector.extract_strided_slice %5 {offsets = [0, 8], sizes = [8, 8], strides = [1, 1]} : vector<8x128xf32> to vector<8x8xf32>
    %47 = vector.extract_strided_slice %5 {offsets = [0, 40], sizes = [8, 8], strides = [1, 1]} : vector<8x128xf32> to vector<8x8xf32>
    %48 = vector.extract_strided_slice %5 {offsets = [0, 72], sizes = [8, 8], strides = [1, 1]} : vector<8x128xf32> to vector<8x8xf32>
    %49 = vector.extract_strided_slice %5 {offsets = [0, 104], sizes = [8, 8], strides = [1, 1]} : vector<8x128xf32> to vector<8x8xf32>
    %50 = vector.extract_strided_slice %7 {offsets = [0, 8], sizes = [8, 8], strides = [1, 1]} : vector<8x128xf32> to vector<8x8xf32>
    %51 = vector.extract_strided_slice %7 {offsets = [0, 40], sizes = [8, 8], strides = [1, 1]} : vector<8x128xf32> to vector<8x8xf32>
    %52 = vector.extract_strided_slice %7 {offsets = [0, 72], sizes = [8, 8], strides = [1, 1]} : vector<8x128xf32> to vector<8x8xf32>
    %53 = vector.extract_strided_slice %7 {offsets = [0, 104], sizes = [8, 8], strides = [1, 1]} : vector<8x128xf32> to vector<8x8xf32>
    %cst_22 = arith.constant dense<0.000000e+00> : vector<8x8xf32>
    %54 = tpu.matmul %46, %47, %cst_22 {dimension_numbers = #tpu.dot_dimension_numbers<[1], [1], [0], [0], [0, 0, 1, 0], [], []>} : vector<8x8xf32>, vector<8x8xf32>, vector<8x8xf32> -> vector<8x8xf32>
    %cst_23 = arith.constant 0.353553385 : f32
    %55 = vector.broadcast %cst_23 : f32 to vector<8x8xf32>
    %56 = arith.mulf %55, %54 : vector<8x8xf32>
    %cst_24 = arith.constant dense<0.000000e+00> : vector<8x8xf32>
    %57 = tpu.matmul %50, %51, %cst_24 {dimension_numbers = #tpu.dot_dimension_numbers<[1], [1], [0], [0], [0, 0, 1, 0], [], []>} : vector<8x8xf32>, vector<8x8xf32>, vector<8x8xf32> -> vector<8x8xf32>
    %cst_25 = arith.constant 0.353553385 : f32
    %58 = vector.broadcast %cst_25 : f32 to vector<8x8xf32>
    %59 = arith.mulf %58, %57 : vector<8x8xf32>
    %cst_26 = arith.constant dense<0xFF800000> : vector<8xf32>
    %60 = vector.multi_reduction <maximumf>, %56, %cst_26 [1] : vector<8x8xf32> to vector<8xf32>
    %61 = vector.shape_cast %60 : vector<8xf32> to vector<8x1xf32>
    %62 = vector.broadcast %61 : vector<8x1xf32> to vector<8x8xf32>
    %63 = arith.subf %56, %62 : vector<8x8xf32>
    %64 = math.exp %63 : vector<8x8xf32>
    %cst_27 = arith.constant dense<0.000000e+00> : vector<8xf32>
    %65 = vector.multi_reduction <add>, %64, %cst_27 [1] : vector<8x8xf32> to vector<8xf32>
    %66 = vector.shape_cast %65 : vector<8xf32> to vector<8x1xf32>
    %67 = tpu.reciprocal %66 {approx = true} : vector<8x1xf32> -> vector<8x1xf32>
    %68 = vector.broadcast %67 : vector<8x1xf32> to vector<8x8xf32>
    %69 = arith.mulf %64, %68 : vector<8x8xf32>
    %cst_28 = arith.constant dense<0xFF800000> : vector<8xf32>
    %70 = vector.multi_reduction <maximumf>, %59, %cst_28 [1] : vector<8x8xf32> to vector<8xf32>
    %71 = vector.shape_cast %70 : vector<8xf32> to vector<8x1xf32>
    %72 = vector.broadcast %71 : vector<8x1xf32> to vector<8x8xf32>
    %73 = arith.subf %59, %72 : vector<8x8xf32>
    %74 = math.exp %73 : vector<8x8xf32>
    %cst_29 = arith.constant dense<0.000000e+00> : vector<8xf32>
    %75 = vector.multi_reduction <add>, %74, %cst_29 [1] : vector<8x8xf32> to vector<8xf32>
    %76 = vector.shape_cast %75 : vector<8xf32> to vector<8x1xf32>
    %77 = tpu.reciprocal %76 {approx = true} : vector<8x1xf32> -> vector<8x1xf32>
    %78 = vector.broadcast %77 : vector<8x1xf32> to vector<8x8xf32>
    %79 = arith.mulf %74, %78 : vector<8x8xf32>
    %cst_30 = arith.constant dense<0.000000e+00> : vector<8x8xf32>
    %80 = tpu.matmul %69, %48, %cst_30 {dimension_numbers = #tpu.dot_dimension_numbers<[1], [0], [0], [1], [0, 0, 1, 1], [], []>} : vector<8x8xf32>, vector<8x8xf32>, vector<8x8xf32> -> vector<8x8xf32>
    %cst_31 = arith.constant dense<0.000000e+00> : vector<8x8xf32>
    %81 = tpu.matmul %79, %49, %cst_31 {dimension_numbers = #tpu.dot_dimension_numbers<[1], [0], [0], [1], [0, 0, 1, 1], [], []>} : vector<8x8xf32>, vector<8x8xf32>, vector<8x8xf32> -> vector<8x8xf32>
    %cst_32 = arith.constant dense<0.000000e+00> : vector<8x8xf32>
    %82 = tpu.matmul %69, %52, %cst_32 {dimension_numbers = #tpu.dot_dimension_numbers<[1], [0], [0], [1], [0, 0, 1, 1], [], []>} : vector<8x8xf32>, vector<8x8xf32>, vector<8x8xf32> -> vector<8x8xf32>
    %cst_33 = arith.constant dense<0.000000e+00> : vector<8x8xf32>
    %83 = tpu.matmul %79, %53, %cst_33 {dimension_numbers = #tpu.dot_dimension_numbers<[1], [0], [0], [1], [0, 0, 1, 1], [], []>} : vector<8x8xf32>, vector<8x8xf32>, vector<8x8xf32> -> vector<8x8xf32>
    %84 = vector.extract_strided_slice %5 {offsets = [0, 16], sizes = [8, 8], strides = [1, 1]} : vector<8x128xf32> to vector<8x8xf32>
    %85 = vector.extract_strided_slice %5 {offsets = [0, 48], sizes = [8, 8], strides = [1, 1]} : vector<8x128xf32> to vector<8x8xf32>
    %86 = vector.extract_strided_slice %5 {offsets = [0, 80], sizes = [8, 8], strides = [1, 1]} : vector<8x128xf32> to vector<8x8xf32>
    %87 = vector.extract_strided_slice %5 {offsets = [0, 112], sizes = [8, 8], strides = [1, 1]} : vector<8x128xf32> to vector<8x8xf32>
    %88 = vector.extract_strided_slice %7 {offsets = [0, 16], sizes = [8, 8], strides = [1, 1]} : vector<8x128xf32> to vector<8x8xf32>
    %89 = vector.extract_strided_slice %7 {offsets = [0, 48], sizes = [8, 8], strides = [1, 1]} : vector<8x128xf32> to vector<8x8xf32>
    %90 = vector.extract_strided_slice %7 {offsets = [0, 80], sizes = [8, 8], strides = [1, 1]} : vector<8x128xf32> to vector<8x8xf32>
    %91 = vector.extract_strided_slice %7 {offsets = [0, 112], sizes = [8, 8], strides = [1, 1]} : vector<8x128xf32> to vector<8x8xf32>
    %cst_34 = arith.constant dense<0.000000e+00> : vector<8x8xf32>
    %92 = tpu.matmul %84, %85, %cst_34 {dimension_numbers = #tpu.dot_dimension_numbers<[1], [1], [0], [0], [0, 0, 1, 0], [], []>} : vector<8x8xf32>, vector<8x8xf32>, vector<8x8xf32> -> vector<8x8xf32>
    %cst_35 = arith.constant 0.353553385 : f32
    %93 = vector.broadcast %cst_35 : f32 to vector<8x8xf32>
    %94 = arith.mulf %93, %92 : vector<8x8xf32>
    %cst_36 = arith.constant dense<0.000000e+00> : vector<8x8xf32>
    %95 = tpu.matmul %88, %89, %cst_36 {dimension_numbers = #tpu.dot_dimension_numbers<[1], [1], [0], [0], [0, 0, 1, 0], [], []>} : vector<8x8xf32>, vector<8x8xf32>, vector<8x8xf32> -> vector<8x8xf32>
    %cst_37 = arith.constant 0.353553385 : f32
    %96 = vector.broadcast %cst_37 : f32 to vector<8x8xf32>
    %97 = arith.mulf %96, %95 : vector<8x8xf32>
    %cst_38 = arith.constant dense<0xFF800000> : vector<8xf32>
    %98 = vector.multi_reduction <maximumf>, %94, %cst_38 [1] : vector<8x8xf32> to vector<8xf32>
    %99 = vector.shape_cast %98 : vector<8xf32> to vector<8x1xf32>
    %100 = vector.broadcast %99 : vector<8x1xf32> to vector<8x8xf32>
    %101 = arith.subf %94, %100 : vector<8x8xf32>
    %102 = math.exp %101 : vector<8x8xf32>
    %cst_39 = arith.constant dense<0.000000e+00> : vector<8xf32>
    %103 = vector.multi_reduction <add>, %102, %cst_39 [1] : vector<8x8xf32> to vector<8xf32>
    %104 = vector.shape_cast %103 : vector<8xf32> to vector<8x1xf32>
    %105 = tpu.reciprocal %104 {approx = true} : vector<8x1xf32> -> vector<8x1xf32>
    %106 = vector.broadcast %105 : vector<8x1xf32> to vector<8x8xf32>
    %107 = arith.mulf %102, %106 : vector<8x8xf32>
    %cst_40 = arith.constant dense<0xFF800000> : vector<8xf32>
    %108 = vector.multi_reduction <maximumf>, %97, %cst_40 [1] : vector<8x8xf32> to vector<8xf32>
    %109 = vector.shape_cast %108 : vector<8xf32> to vector<8x1xf32>
    %110 = vector.broadcast %109 : vector<8x1xf32> to vector<8x8xf32>
    %111 = arith.subf %97, %110 : vector<8x8xf32>
    %112 = math.exp %111 : vector<8x8xf32>
    %cst_41 = arith.constant dense<0.000000e+00> : vector<8xf32>
    %113 = vector.multi_reduction <add>, %112, %cst_41 [1] : vector<8x8xf32> to vector<8xf32>
    %114 = vector.shape_cast %113 : vector<8xf32> to vector<8x1xf32>
    %115 = tpu.reciprocal %114 {approx = true} : vector<8x1xf32> -> vector<8x1xf32>
    %116 = vector.broadcast %115 : vector<8x1xf32> to vector<8x8xf32>
    %117 = arith.mulf %112, %116 : vector<8x8xf32>
    %cst_42 = arith.constant dense<0.000000e+00> : vector<8x8xf32>
    %118 = tpu.matmul %107, %86, %cst_42 {dimension_numbers = #tpu.dot_dimension_numbers<[1], [0], [0], [1], [0, 0, 1, 1], [], []>} : vector<8x8xf32>, vector<8x8xf32>, vector<8x8xf32> -> vector<8x8xf32>
    %cst_43 = arith.constant dense<0.000000e+00> : vector<8x8xf32>
    %119 = tpu.matmul %117, %87, %cst_43 {dimension_numbers = #tpu.dot_dimension_numbers<[1], [0], [0], [1], [0, 0, 1, 1], [], []>} : vector<8x8xf32>, vector<8x8xf32>, vector<8x8xf32> -> vector<8x8xf32>
    %cst_44 = arith.constant dense<0.000000e+00> : vector<8x8xf32>
    %120 = tpu.matmul %107, %90, %cst_44 {dimension_numbers = #tpu.dot_dimension_numbers<[1], [0], [0], [1], [0, 0, 1, 1], [], []>} : vector<8x8xf32>, vector<8x8xf32>, vector<8x8xf32> -> vector<8x8xf32>
    %cst_45 = arith.constant dense<0.000000e+00> : vector<8x8xf32>
    %121 = tpu.matmul %117, %91, %cst_45 {dimension_numbers = #tpu.dot_dimension_numbers<[1], [0], [0], [1], [0, 0, 1, 1], [], []>} : vector<8x8xf32>, vector<8x8xf32>, vector<8x8xf32> -> vector<8x8xf32>
    %122 = vector.extract_strided_slice %5 {offsets = [0, 24], sizes = [8, 8], strides = [1, 1]} : vector<8x128xf32> to vector<8x8xf32>
    %123 = vector.extract_strided_slice %5 {offsets = [0, 56], sizes = [8, 8], strides = [1, 1]} : vector<8x128xf32> to vector<8x8xf32>
    %124 = vector.extract_strided_slice %5 {offsets = [0, 88], sizes = [8, 8], strides = [1, 1]} : vector<8x128xf32> to vector<8x8xf32>
    %125 = vector.extract_strided_slice %5 {offsets = [0, 120], sizes = [8, 8], strides = [1, 1]} : vector<8x128xf32> to vector<8x8xf32>
    %126 = vector.extract_strided_slice %7 {offsets = [0, 24], sizes = [8, 8], strides = [1, 1]} : vector<8x128xf32> to vector<8x8xf32>
    %127 = vector.extract_strided_slice %7 {offsets = [0, 56], sizes = [8, 8], strides = [1, 1]} : vector<8x128xf32> to vector<8x8xf32>
    %128 = vector.extract_strided_slice %7 {offsets = [0, 88], sizes = [8, 8], strides = [1, 1]} : vector<8x128xf32> to vector<8x8xf32>
    %129 = vector.extract_strided_slice %7 {offsets = [0, 120], sizes = [8, 8], strides = [1, 1]} : vector<8x128xf32> to vector<8x8xf32>
    %cst_46 = arith.constant dense<0.000000e+00> : vector<8x8xf32>
    %130 = tpu.matmul %122, %123, %cst_46 {dimension_numbers = #tpu.dot_dimension_numbers<[1], [1], [0], [0], [0, 0, 1, 0], [], []>} : vector<8x8xf32>, vector<8x8xf32>, vector<8x8xf32> -> vector<8x8xf32>
    %cst_47 = arith.constant 0.353553385 : f32
    %131 = vector.broadcast %cst_47 : f32 to vector<8x8xf32>
    %132 = arith.mulf %131, %130 : vector<8x8xf32>
    %cst_48 = arith.constant dense<0.000000e+00> : vector<8x8xf32>
    %133 = tpu.matmul %126, %127, %cst_48 {dimension_numbers = #tpu.dot_dimension_numbers<[1], [1], [0], [0], [0, 0, 1, 0], [], []>} : vector<8x8xf32>, vector<8x8xf32>, vector<8x8xf32> -> vector<8x8xf32>
    %cst_49 = arith.constant 0.353553385 : f32
    %134 = vector.broadcast %cst_49 : f32 to vector<8x8xf32>
    %135 = arith.mulf %134, %133 : vector<8x8xf32>
    %cst_50 = arith.constant dense<0xFF800000> : vector<8xf32>
    %136 = vector.multi_reduction <maximumf>, %132, %cst_50 [1] : vector<8x8xf32> to vector<8xf32>
    %137 = vector.shape_cast %136 : vector<8xf32> to vector<8x1xf32>
    %138 = vector.broadcast %137 : vector<8x1xf32> to vector<8x8xf32>
    %139 = arith.subf %132, %138 : vector<8x8xf32>
    %140 = math.exp %139 : vector<8x8xf32>
    %cst_51 = arith.constant dense<0.000000e+00> : vector<8xf32>
    %141 = vector.multi_reduction <add>, %140, %cst_51 [1] : vector<8x8xf32> to vector<8xf32>
    %142 = vector.shape_cast %141 : vector<8xf32> to vector<8x1xf32>
    %143 = tpu.reciprocal %142 {approx = true} : vector<8x1xf32> -> vector<8x1xf32>
    %144 = vector.broadcast %143 : vector<8x1xf32> to vector<8x8xf32>
    %145 = arith.mulf %140, %144 : vector<8x8xf32>
    %cst_52 = arith.constant dense<0xFF800000> : vector<8xf32>
    %146 = vector.multi_reduction <maximumf>, %135, %cst_52 [1] : vector<8x8xf32> to vector<8xf32>
    %147 = vector.shape_cast %146 : vector<8xf32> to vector<8x1xf32>
    %148 = vector.broadcast %147 : vector<8x1xf32> to vector<8x8xf32>
    %149 = arith.subf %135, %148 : vector<8x8xf32>
    %150 = math.exp %149 : vector<8x8xf32>
    %cst_53 = arith.constant dense<0.000000e+00> : vector<8xf32>
    %151 = vector.multi_reduction <add>, %150, %cst_53 [1] : vector<8x8xf32> to vector<8xf32>
    %152 = vector.shape_cast %151 : vector<8xf32> to vector<8x1xf32>
    %153 = tpu.reciprocal %152 {approx = true} : vector<8x1xf32> -> vector<8x1xf32>
    %154 = vector.broadcast %153 : vector<8x1xf32> to vector<8x8xf32>
    %155 = arith.mulf %150, %154 : vector<8x8xf32>
    %cst_54 = arith.constant dense<0.000000e+00> : vector<8x8xf32>
    %156 = tpu.matmul %145, %124, %cst_54 {dimension_numbers = #tpu.dot_dimension_numbers<[1], [0], [0], [1], [0, 0, 1, 1], [], []>} : vector<8x8xf32>, vector<8x8xf32>, vector<8x8xf32> -> vector<8x8xf32>
    %cst_55 = arith.constant dense<0.000000e+00> : vector<8x8xf32>
    %157 = tpu.matmul %155, %125, %cst_55 {dimension_numbers = #tpu.dot_dimension_numbers<[1], [0], [0], [1], [0, 0, 1, 1], [], []>} : vector<8x8xf32>, vector<8x8xf32>, vector<8x8xf32> -> vector<8x8xf32>
    %cst_56 = arith.constant dense<0.000000e+00> : vector<8x8xf32>
    %158 = tpu.matmul %145, %128, %cst_56 {dimension_numbers = #tpu.dot_dimension_numbers<[1], [0], [0], [1], [0, 0, 1, 1], [], []>} : vector<8x8xf32>, vector<8x8xf32>, vector<8x8xf32> -> vector<8x8xf32>
    %cst_57 = arith.constant dense<0.000000e+00> : vector<8x8xf32>
    %159 = tpu.matmul %155, %129, %cst_57 {dimension_numbers = #tpu.dot_dimension_numbers<[1], [0], [0], [1], [0, 0, 1, 1], [], []>} : vector<8x8xf32>, vector<8x8xf32>, vector<8x8xf32> -> vector<8x8xf32>
    %160 = tpu.concatenate %42, %43, %80, %81, %118, %119, %156, %157, %44, %45, %82, %83, %120, %121, %158, %159 in 1 : vector<8x8xf32>, vector<8x8xf32>, vector<8x8xf32>, vector<8x8xf32>, vector<8x8xf32>, vector<8x8xf32>, vector<8x8xf32>, vector<8x8xf32>, vector<8x8xf32>, vector<8x8xf32>, vector<8x8xf32>, vector<8x8xf32>, vector<8x8xf32>, vector<8x8xf32>, vector<8x8xf32>, vector<8x8xf32> -> vector<8x128xf32>
    %c0_58 = arith.constant 0 : index
    %c0_59 = arith.constant 0 : index
    %161 = vector.load %arg5[%c0_58, %c0_59] : memref<128x64xf32, #tpu.memory_space<vmem>>, vector<128x64xf32>
    %cst_60 = arith.constant dense<0.000000e+00> : vector<8x64xf32>
    %162 = tpu.matmul %160, %161, %cst_60 {dimension_numbers = #tpu.dot_dimension_numbers<[1], [0], [0], [1], [0, 0, 1, 1], [], []>} : vector<8x128xf32>, vector<128x64xf32>, vector<8x64xf32> -> vector<8x64xf32>
    %c0_61 = arith.constant 0 : index
    %c0_62 = arith.constant 0 : index
    %c0_63 = arith.constant 0 : index
    %163 = vector.load %arg6[%c0_61, %c0_62, %c0_63] : memref<1x8x64xf32, #tpu.memory_space<vmem>>, vector<1x8x64xf32>
    %164 = vector.shape_cast %163 : vector<1x8x64xf32> to vector<8x64xf32>
    %165 = vector.shape_cast %162 : vector<8x64xf32> to vector<1x8x64xf32>
    tpu.vector_store %arg6[%c0_61, %c0_62, %c0_63], %165 {strides = array<i32>} : memref<1x8x64xf32, #tpu.memory_space<vmem>>, vector<1x8x64xf32>,
    return
  }
  func.func @transform_0(%arg0: i32) -> (i32, i32, i32) {
    %c0_i32 = arith.constant 0 : i32
    %c0_i32_0 = arith.constant 0 : i32
    %c0_i32_1 = arith.constant 0 : i32
    return %arg0, %c0_i32, %c0_i32_0 : i32, i32, i32
  }
  func.func @transform_1(%arg0: i32) -> (i32, i32, i32) {
    %c0_i32 = arith.constant 0 : i32
    %c0_i32_0 = arith.constant 0 : i32
    %c0_i32_1 = arith.constant 0 : i32
    return %arg0, %c0_i32, %c0_i32_0 : i32, i32, i32
  }
  func.func @transform_2(%arg0: i32) -> (i32, i32) {
    %c0_i32 = arith.constant 0 : i32
    %c0_i32_0 = arith.constant 0 : i32
    %c0_i32_1 = arith.constant 0 : i32
    return %c0_i32, %c0_i32_0 : i32, i32
  }
  func.func @transform_3(%arg0: i32) -> (i32, i32) {
    %c0_i32 = arith.constant 0 : i32
    %c0_i32_0 = arith.constant 0 : i32
    %c0_i32_1 = arith.constant 0 : i32
    return %c0_i32, %c0_i32_0 : i32, i32
  }
  func.func @transform_4(%arg0: i32) -> (i32, i32) {
    %c0_i32 = arith.constant 0 : i32
    %c0_i32_0 = arith.constant 0 : i32
    %c0_i32_1 = arith.constant 0 : i32
    return %c0_i32, %c0_i32_0 : i32, i32
  }
  func.func @transform_5(%arg0: i32) -> (i32, i32, i32) {
    %c0_i32 = arith.constant 0 : i32
    %c0_i32_0 = arith.constant 0 : i32
    %c0_i32_1 = arith.constant 0 : i32
    return %arg0, %c0_i32, %c0_i32_0 : i32, i32, i32
  }
}

</mosaic_0001>

<bundles_post_ra>
// kernel: tpu_custom_call.1
= control target key start
LH: loop header
LB: loop body
LE: loop exit
PB: predicated region body
PF: predicated region fallthrough
CT: control target
= control target key end

     0   :  { %10 = vsyncpa [#allocation3], 0  ;;  %s1776_s0 = inlined_call_operand.vmem [shape: f32[2,8,32], index: 0, kind: input, shape index: {}]   ;;  %s1777_s1 = inlined_call_operand.vmem [shape: f32[2,8,32], index: 1, kind: input, shape index: {}]   ;;  %s1778_s2 = inlined_call_operand.vmem [shape: f32[32,128], index: 2, kind: input, shape index: {}]   ;;  %s1779_s3 = inlined_call_operand.vmem [shape: f32[32,128], index: 3, kind: input, shape index: {}]   ;;  %s1780_s4 = inlined_call_operand.vmem [shape: f32[128,64], index: 4, kind: input, shape index: {}]   ;;  %s1781_s5 = inlined_call_operand.hbm [shape: f32[2,8,64], index: 5, kind: output, shape index: {}]  }
   0x1   :  { %12 = vsyncpa [#allocation3 + $0x1], 0  ;;  %s1467_s18 = smov 0   ;;  %s1469_s19 = smov 0  }
   0x2   :  { %s1471_s20 = smov 0   ;;  %s1473_s21 = smov 0  }
   0x3 LB: > { %s1488_s22 = sadd.s32 4294967295, %s1420_s21   ;;  %s1217_s23 = sadd.s32 4294967294, %s1420_s21   ;;  %s1420_s21 = sphi %s1473_s21, %s1787_s21   ;;  %s1416_s20 = sphi %s1471_s20, %s1786_s20   ;;  %s1412_s19 = sphi %s1469_s19, %s1785_s19   ;;  %s1408_s18 = sphi %s1467_s18, %s1784_s18  }
   0x4   : > { %s1492_s24 = sadd.s32 1, %s1420_s21   ;;  %s140_s25 = sadd.s32 1, %s1416_s20 }
   0x5   : > { %s137_s26 = ssub.s32 %s1420_s21, %s1492_s24  ;;  %p150_p0 = scmp.ne.s32.totalorder %s1416_s20, %s1412_s19 }
   0x6   : > { %p138_p1 = scmp.eq.s32.totalorder %s137_s26, 0  ;;  %p151_p2 = scmp.eq.s32.totalorder %s1488_s22, 1 }
   0x7   : > { %p156_p3 = scmp.ne.s32.totalorder %s1412_s19, %s1408_s18  ;;  %p157_p4 = scmp.eq.s32.totalorder %s1217_s23, 1 }
   0x8   : > { %s1503_s27 = scalar_select %p138_p1, %s1416_s20, %s140_s25  }
   0x9   : > { %p1505_p5 = por %p151_p2, %p150_p0  ;;  %p1509_p6 = por %p157_p4, %p156_p3 }
   0xa   : > { %p1220_p7 = scmp.ge.s32.totalorder %s1420_s21, 1  ;;  %p198_p8 = scmp.lt.s32.totalorder %s1420_s21, 3 }
   0xc   : > { %p199_p9 = pnand %p1220_p7, %p198_p8 }
   0xd   : > { %p229_p10 = scmp.lt.s32.totalorder (!%p199_p9), %s1488_s22, 1  ;;  %s1422_s13 = smov (!%p199_p9), 32  }
   0xe   : > { %202 = sbr.rel (%p199_p9) target bundleno = 2264 (0x8d8), region = 40  ;;  %s1423_s15 = smov (!%p199_p9), 96  }
   0xf   : > { %s1425_s16 = smov (!%p199_p9), 88   ;;  %s1427_s23 = smov (!%p199_p9), 56  }
  0x10   : > { %s1428_s25 = smov (!%p199_p9), 24   ;;  %s1429_s26 = smov (!%p199_p9), 80  }
  0x11   : > { %s1430_s30 = smov (!%p199_p9), 112   ;;  %s1431_s6 = smov (!%p199_p9), 72  }
  0x12   : > { %s1432_s7 = smov (!%p199_p9), 48   ;;  %s1433_s8 = smov (!%p199_p9), 16  }
  0x13   : > { %v242_v0 = vld [vmem:[%s1778_s2 + $0x18] sm:$0xff]  ;;  %v241_v1 = vld [vmem:[%s1778_s2 + $0x10] sm:$0xff]  ;;  %v240_v2 = vld [vmem:[%s1778_s2 + $0x8] sm:$0xff]  ;;  %s230_s11 = scalar_select %p229_p10, %s1488_s22, 1  ;;  %vm243_vm0 = vcmask 261120   ;;  %vm297_vm1 = vcmask 64512  }
  0x14   : > { %259 = vmatpush.msra.mxu1 %v242_v0  ;;  %v239_v3 = vld [vmem:[%s1778_s2] sm:$0xff]  ;;  %v270_v5 = vld [vmem:[%s1779_s3 + $0x18] sm:$0xff]  ;;  %v269_v6 = vld [vmem:[%s1779_s3 + $0x10] sm:$0xff]  ;;  %s1434_s9 = smov 104   ;;  %vm1066_vm2 = vcmask 130048   ;;  %vm1068_vm3 = vcmask 195584  }
  0x15   : > { %s1222_s14 = sshll.u32 %s230_s11, 3  ;;  %v268_v7 = vld [vmem:[%s1779_s3 + $0x8] sm:$0xff]  ;;  %v267_v8 = vld [vmem:[%s1779_s3] sm:$0xff]  ;;  %s1436_s11 = smov 40   ;;  %vm1071_vm4 = vcmask 326656   ;;  %vm1073_vm5 = vcmask 392192  }
  0x16   : > { %260 = vmatpush.msra.mxu1 %v241_v1  ;;  %s232_s17 = scalar_lea.vmem %s1776_s0, %s1222_s14  ;;  %s236_s10 = scalar_lea.vmem %s1777_s1, %s1222_s14  ;;  %vm1075_vm6 = vcmask 457728   ;;  %vm1077_vm7 = vcmask 523264   ;;  %vm1079_vm8 = vcmask 588800   ;;  %vm1081_vm9 = vcmask 654336  }
  0x17   : > { %v237_v4 = vld [vmem:[%s232_s17] sm:$0xff]  ;;  %s1424_s14 = smov 64   ;;  %s1426_s17 = smov 120   ;;  %vm1083_vm10 = vcmask 719872   ;;  %vm1085_vm11 = vcmask 785408   ;;  %vm1087_vm12 = vcmask 850944  }
  0x18   : > { %261 = vmatpush.msra.mxu1 %v240_v2  ;;  %v238_v9 = vld [vmem:[%s236_s10] sm:$0xff]  ;;  %s1435_s10 = smov 8   ;;  %vm1089_vm13 = vcmask 916480   ;;  %vm1091_vm14 = vcmask 982016   ;;  %s226_s12 = sand.u32 1, %s1412_s19  }
  0x1a   : > { %262 = vmatpush.msra.mxu1 %v239_v3 }
  0x1b   : > { %1224 = vmatmul.msk.f32.vlgmr.msra.gmra.mxu1 %vm243_vm0, %v237_v4 }
  0x1c   : > { %286 = vmatpush.msrb.mxu1 %v270_v5 }
  0x1e   : > { %287 = vmatpush.msrb.mxu1 %v269_v6 }
  0x20   : > { %288 = vmatpush.msrb.mxu1 %v268_v7 }
  0x22   : > { %289 = vmatpush.msrb.mxu1 %v267_v8 }
  0x23   : > { %1225 = vmatmul.msk.f32.vlgmr.msrb.gmra.mxu1 %vm243_vm0, %v238_v9 }
  0x98   : > { %v1549_v10 = vpop.f32.mrf.mxu1 }
  0x99   : > { %399 = vrot.lane.b32.xlu2 %v1549_v10, %s1422_s13  ;;  %295 = vrot.lane.b32.xlu0 %v1549_v10, %s1423_s15 }
  0xa0   : > { %v1555_v11 = vpop.f32.mrf.mxu1 }
  0xa1   : > { %324 = vrot.lane.b32.xlu0 %v1555_v11, %s1423_s15 }
  0xa9   : > { %373 = vrot.lane.b32.xlu0 %v1549_v10, %s1424_s14 }
  0xb1   : > { %473 = vrot.lane.b32.xlu0 %v1549_v10, %s1425_s16 }
  0xb9   : > { %502 = vrot.lane.b32.xlu0 %v1555_v11, %s1425_s16 }
  0xc1   : > { %471 = vrot.lane.b32.xlu0 %v1549_v10, %s1426_s17 }
  0xf3   : > { %v400_v14 = vpop.permute.xlu2 %399 }
 0x10b   : > { %v296_v12 = vpop.permute.xlu0 %295 }
 0x10c   : > { %1226 = vmatpush.xpose.msk.msra.mxu2 %vm297_vm1, %v296_v12 }
 0x10f   : > { %1227 = vmatmul.msk.f32.vlgmr.msra.gmra.mxu2 %vm297_vm1, %v1549_v10 }
 0x113   : > { %v325_v13 = vpop.permute.xlu0 %324 }
 0x114   : > { %1228 = vmatpush.xpose.msk.msra.mxu3 %vm297_vm1, %v325_v13 }
 0x117   : > { %1229 = vmatmul.msk.f32.vlgmr.msra.gmra.mxu3 %vm297_vm1, %v1555_v11 }
 0x118   : > { %420 = vmatpush.msrb.mxu3 %v400_v14 }
 0x11b   : > { %v374_v15 = vpop.permute.xlu0 %373 }
 0x11c   : > { %394 = vmatpush.msrb.mxu2 %v374_v15 }
 0x123   : > { %v474_v16 = vpop.permute.xlu0 %473 }
 0x12b   : > { %v503_v17 = vpop.permute.xlu0 %502 }
 0x12c   : > { %1236 = vmatpush.xpose.msk.msra.mxu3 %vm297_vm1, %v503_v17 }
 0x133   : > { %v472_v43 = vpop.permute.xlu0 %471 }
 0x192   : > { %v319_v18 = vpop.f32.mrf.mxu2 }
 0x193   : > { %v322_v19 = vmul.f32 0.35355338, %v319_v18 }
 0x195   : > { %v351_v20 = vsel %vm297_vm1, %v322_v19, -inf }
 0x196   : > { %352 = vmax.xlane.f32.xlu1 %v351_v20 }
 0x19a   : > { %v347_v21 = vpop.f32.mrf.mxu3 }
 0x19b   : > { %v350_v22 = vmul.f32 0.35355338, %v347_v21 }
 0x19d   : > { %v362_v23 = vsel %vm297_vm1, %v350_v22, -inf }
 0x19e   : > { %363 = vmax.xlane.f32.xlu1 %v362_v23 }
 0x1b7   : > { %425 = vrot.lane.b32.xlu1 %v1555_v11, %s1424_s14 }
 0x209   : > { %v353_v24 = vpop.xlane.xlu1 %352 }
 0x20a   : > { %v354_v25 = vsub.f32 %v322_v19, %v353_v24 }
 0x20c   : > { %v355_v26 = vmul.f32 1.442695, %v354_v25 }
 0x20e   : > { %1326 = vpow2.f32 %v355_v26 }
 0x211   : > { %v364_v27 = vpop.xlane.xlu1 %363 }
 0x212   : > { %v365_v28 = vsub.f32 %v350_v22, %v364_v27 }
 0x214   : > { %v1327_v29 = vpop.eup %1326  ;;  %v366_v30 = vmul.f32 1.442695, %v365_v28 }
 0x215   : > { %v357_v31 = vsel %vm297_vm1, %v1327_v29, 0.0 }
 0x216   : > { %1328 = vpow2.f32 %v366_v30  ;;  %358 = vadd.xlane.f32.xlu2 %v357_v31 }
 0x21c   : > { %v1329_v32 = vpop.eup %1328 }
 0x21d   : > { %v368_v33 = vsel %vm297_vm1, %v1329_v32, 0.0 }
 0x21e   : > { %369 = vadd.xlane.f32.xlu2 %v368_v33 }
 0x229   : > { %v426_v34 = vpop.permute.xlu1 %425 }
 0x22a   : > { %443 = vmatpush.msra.mxu2 %v426_v34 }
 0x236   : > { %500 = vrot.lane.b32.xlu2 %v1555_v11, %s1426_s17 }
 0x23e   : > { %448 = vrot.lane.b32.xlu2 %v1555_v11, %s1422_s13 }
 0x289   : > { %v359_v35 = vpop.xlane.xlu2 %358 }
 0x28a   : > { %1330 = vrcp.f32 %v359_v35 }
 0x290   : > { %v1331_v36 = vpop.eup %1330 }
 0x291   : > { %v370_v37 = vpop.xlane.xlu2 %369  ;;  %v361_v38 = vmul.f32 %v1331_v36, %v1327_v29 }
 0x292   : > { %1332 = vrcp.f32 %v370_v37 }
 0x293   : > { %1230 = vmatmul.msk.f32.vlgmr.msrb.gmra.mxu2 %vm297_vm1, %v361_v38 }
 0x294   : > { %1234 = vmatpush.xpose.msk.msrb.mxu2 %vm297_vm1, %v474_v16 }
 0x298   : > { %v1333_v39 = vpop.eup %1332 }
 0x299   : > { %v501_v40 = vpop.permute.xlu2 %500  ;;  %v372_v41 = vmul.f32 %v1333_v39, %v1329_v32 }
 0x29b   : > { %1231 = vmatmul.msk.f32.vlgmr.msrb.gmra.mxu3 %vm297_vm1, %v372_v41  ;;  %1232 = vmatmul.msk.f32.vlgmr.msra.gmra.mxu2 %vm297_vm1, %v361_v38 }
 0x2a1   : > { %v449_v42 = vpop.permute.xlu2 %448 }
 0x2a2   : > { %466 = vmatpush.msra.mxu1 %v449_v42 }
 0x2a3   : > { %1233 = vmatmul.msk.f32.vlgmr.msra.gmra.mxu1 %vm297_vm1, %v372_v41  ;;  %1235 = vmatmul.msk.f32.vlgmr.msrb.gmra.mxu2 %vm297_vm1, %v472_v43 }
 0x2a4   : > { %1237 = vmatmul.msk.f32.vlgmr.msra.gmra.mxu3 %vm297_vm1, %v501_v40 }
 0x316   : > { %v1591_v44 = vpop.f32.mrf.mxu2 }
 0x31e   : > { %v1593_v45 = vpop.f32.mrf.mxu3  ;;  %v1595_v46 = vpop.f32.mrf.mxu2 }
 0x320   : > { %v1624_v14 = vpop.f32.mrf.mxu1 }
 0x326   : > { %v496_v47 = vpop.f32.mrf.mxu2 }
 0x327   : > { %v499_v48 = vmul.f32 0.35355338, %v496_v47  ;;  %v525_v49 = vpop.f32.mrf.mxu3 }
 0x328   : > { %v528_v50 = vmul.f32 0.35355338, %v525_v49 }
 0x329   : > { %v529_v51 = vsel %vm297_vm1, %v499_v48, -inf }
 0x32a   : > { %v540_v52 = vsel %vm297_vm1, %v528_v50, -inf  ;;  %530 = vmax.xlane.f32.xlu1 %v529_v51 }
 0x32b   : > { %541 = vmax.xlane.f32.xlu0 %v540_v52 }
 0x33f   : > { %551 = vrot.lane.b32.xlu0 %v1549_v10, %s1427_s23 }
 0x343   : > { %577 = vrot.lane.b32.xlu1 %v1549_v10, %s1428_s25 }
 0x347   : > { %651 = vrot.lane.b32.xlu0 %v1549_v10, %s1429_s26 }
 0x34f   : > { %678 = vrot.lane.b32.xlu0 %v1555_v11, %s1430_s30 }
 0x357   : > { %626 = vrot.lane.b32.xlu0 %v1555_v11, %s1428_s25 }
 0x35f   : > { %829 = vrot.lane.b32.xlu0 %v1549_v10, %s1431_s6 }
 0x39d   : > { %v531_v53 = vpop.xlane.xlu1 %530 }
 0x39e   : > { %v532_v54 = vsub.f32 %v499_v48, %v531_v53  ;;  %v542_v55 = vpop.xlane.xlu0 %541 }
 0x39f   : > { %v543_v56 = vsub.f32 %v528_v50, %v542_v55 }
 0x3a0   : > { %v533_v57 = vmul.f32 1.442695, %v532_v54 }
 0x3a1   : > { %v544_v58 = vmul.f32 1.442695, %v543_v56 }
 0x3a2   : > { %1334 = vpow2.f32 %v533_v57 }
 0x3a3   : > { %1336 = vpow2.f32 %v544_v58 }
 0x3a8   : > { %v1335_v59 = vpop.eup %1334 }
 0x3a9   : > { %v1337_v60 = vpop.eup %1336  ;;  %v535_v61 = vsel %vm297_vm1, %v1335_v59, 0.0 }
 0x3aa   : > { %536 = vadd.xlane.f32.xlu2 %v535_v61  ;;  %v546_v62 = vsel %vm297_vm1, %v1337_v60, 0.0 }
 0x3ab   : > { %547 = vadd.xlane.f32.xlu1 %v546_v62 }
 0x3b1   : > { %v552_v63 = vpop.permute.xlu0 %551 }
 0x3b2   : > { %572 = vmatpush.msra.mxu0 %v552_v63 }
 0x3b5   : > { %v578_v0 = vpop.permute.xlu1 %577 }
 0x3b6   : > { %598 = vmatpush.msrb.mxu1 %v578_v0 }
 0x3b9   : > { %v652_v1 = vpop.permute.xlu0 %651 }
 0x3ba   : > { %1242 = vmatpush.xpose.msk.msrb.mxu0 %vm297_vm1, %v652_v1 }
 0x3c1   : > { %v679_v2 = vpop.permute.xlu0 %678 }
 0x3c2   : > { %680 = vrot.lane.b32.xlu2 %v1555_v11, %s1429_s26 }
 0x3c4   : > { %649 = vrot.lane.b32.xlu1 %v1549_v10, %s1430_s30 }
 0x3c9   : > { %v627_v3 = vpop.permute.xlu0 %626 }
 0x3ca   : > { %644 = vmatpush.msrb.mxu3 %v627_v3 }
 0x3d1   : > { %v830_v36 = vpop.permute.xlu0 %829 }
 0x41d   : > { %v537_v4 = vpop.xlane.xlu2 %536 }
 0x41e   : > { %1338 = vrcp.f32 %v537_v4  ;;  %v548_v5 = vpop.xlane.xlu1 %547 }
 0x41f   : > { %1340 = vrcp.f32 %v548_v5 }
 0x424   : > { %v1339_v6 = vpop.eup %1338 }
 0x425   : > { %v1341_v7 = vpop.eup %1340  ;;  %v681_v8 = vpop.permute.xlu2 %680  ;;  %v539_v9 = vmul.f32 %v1339_v6, %v1335_v59  ;;  %v1321_v59 = vpack.i.bf16 %v1555_v11, %v1549_v10 }
 0x426   : > { %v550_v12 = vmul.f32 %v1341_v7, %v1337_v60  ;;  %1244 = vmatpush.xpose.msk.msra.mxu1 %vm297_vm1, %v681_v8 }
 0x427   : > { %1238 = vmatmul.msk.f32.vlgmr.msra.gmra.mxu0 %vm297_vm1, %v539_v9 }
 0x428   : > { %1239 = vmatmul.msk.f32.vlgmr.msrb.gmra.mxu1 %vm297_vm1, %v550_v12  ;;  %1241 = vmatmul.msk.f32.vlgmr.msrb.gmra.mxu3 %vm297_vm1, %v550_v12 }
 0x430   : > { %1245 = vmatmul.msk.f32.vlgmr.msra.gmra.mxu1 %vm297_vm1, %v679_v2 }
 0x436   : > { %v650_v13 = vpop.permute.xlu1 %649 }
 0x437   : > { %1243 = vmatmul.msk.f32.vlgmr.msrb.gmra.mxu0 %vm297_vm1, %v650_v13 }
 0x4a4   : > { %v1628_v16 = vpop.f32.mrf.mxu0 }
 0x4a5   : > { %v1626_v15 = vpop.f32.mrf.mxu1 }
 0x4ab   : > { %v646_v49 = vpop.f32.mrf.mxu3 }
 0x4ad   : > { %v703_v17 = vpop.f32.mrf.mxu1 }
 0x4ae   : > { %v706_v18 = vmul.f32 0.35355338, %v703_v17 }
 0x4b0   : > { %v718_v19 = vsel %vm297_vm1, %v706_v18, -inf }
 0x4b1   : > { %719 = vmax.xlane.f32.xlu1 %v718_v19 }
 0x4b4   : > { %v674_v20 = vpop.f32.mrf.mxu0 }
 0x4b5   : > { %v677_v21 = vmul.f32 0.35355338, %v674_v20 }
 0x4b7   : > { %v707_v22 = vsel %vm297_vm1, %v677_v21, -inf }
 0x4b8   : > { %708 = vmax.xlane.f32.xlu2 %v707_v22 }
 0x4ca   : > { %729 = vrot.lane.b32.xlu1 %v1549_v10, %s1432_s7 }
 0x4d0   : > { %603 = vrot.lane.b32.xlu2 %v1555_v11, %s1427_s23 }
 0x4d8   : > { %755 = vrot.lane.b32.xlu2 %v1549_v10, %s1433_s8 }
 0x4e0   : > { %858 = vrot.lane.b32.xlu2 %v1555_v11, %s1431_s6 }
 0x524   : > { %v720_v23 = vpop.xlane.xlu1 %719 }
 0x525   : > { %v721_v24 = vsub.f32 %v706_v18, %v720_v23 }
 0x527   : > { %v722_v25 = vmul.f32 1.442695, %v721_v24  ;;  %v1108_v24 = vld [vmem:[%s1780_s4 + $0x78] sm:$0xff] }
 0x529   : > { %1342 = vpow2.f32 %v722_v25  ;;  %v1107_v25 = vld [vmem:[%s1780_s4 + $0x70] sm:$0xff] }
 0x52b   : > { %v709_v26 = vpop.xlane.xlu2 %708 }
 0x52c   : > { %v710_v27 = vsub.f32 %v677_v21, %v709_v26  ;;  %v1106_v26 = vld [vmem:[%s1780_s4 + $0x68] sm:$0xff] }
 0x52e   : > { %v711_v28 = vmul.f32 1.442695, %v710_v27  ;;  %v1105_v27 = vld [vmem:[%s1780_s4 + $0x60] sm:$0xff] }
 0x52f   : > { %v1343_v29 = vpop.eup %1342 }
 0x530   : > { %1344 = vpow2.f32 %v711_v28  ;;  %v724_v30 = vsel %vm297_vm1, %v1343_v29, 0.0  ;;  %v1104_v28 = vld [vmem:[%s1780_s4 + $0x58] sm:$0xff] }
 0x531   : > { %725 = vadd.xlane.f32.xlu1 %v724_v30  ;;  %v1102_v30 = vld [vmem:[%s1780_s4 + $0x48] sm:$0xff] }
 0x533   : > { %v604_v31 = vpop.permute.xlu2 %603 }
 0x534   : > { %621 = vmatpush.msra.mxu2 %v604_v31  ;;  %v1101_v31 = vld [vmem:[%s1780_s4 + $0x40] sm:$0xff] }
 0x535   : > { %1240 = vmatmul.msk.f32.vlgmr.msra.gmra.mxu2 %vm297_vm1, %v539_v9 }
 0x536   : > { %v1345_v32 = vpop.eup %1344 }
 0x537   : > { %v713_v33 = vsel %vm297_vm1, %v1345_v32, 0.0 }
 0x538   : > { %714 = vadd.xlane.f32.xlu0 %v713_v33  ;;  %v1099_v33 = vld [vmem:[%s1780_s4 + $0x30] sm:$0xff] }
 0x53b   : > { %v756_v34 = vpop.permute.xlu2 %755 }
 0x53c   : > { %v730_v35 = vpop.permute.xlu1 %729  ;;  %776 = vmatpush.msra.mxu3 %v756_v34  ;;  %v1098_v34 = vld [vmem:[%s1780_s4 + $0x28] sm:$0xff] }
 0x53d   : > { %750 = vmatpush.msrb.mxu2 %v730_v35 }
 0x53f   : > { %1250 = vmatpush.xpose.msk.msra.mxu2 %vm297_vm1, %v830_v36  ;;  %v1097_v36 = vld [vmem:[%s1780_s4 + $0x20] sm:$0xff] }
 0x543   : > { %v859_v37 = vpop.permute.xlu2 %858 }
 0x544   : > { %1252 = vmatpush.xpose.msk.msrb.mxu3 %vm297_vm1, %v859_v37  ;;  %v1096_v37 = vld [vmem:[%s1780_s4 + $0x18] sm:$0xff] }
 0x54a   : > { %856 = vrot.lane.b32.xlu1 %v1555_v11, %s1434_s9 }
 0x54c   : > { %827 = vrot.lane.b32.xlu0 %v1549_v10, %s1434_s9 }
 0x5a4   : > { %v726_v38 = vpop.xlane.xlu1 %725 }
 0x5a5   : > { %1346 = vrcp.f32 %v726_v38 }
 0x5ab   : > { %v1347_v39 = vpop.eup %1346  ;;  %v715_v40 = vpop.xlane.xlu0 %714 }
 0x5ac   : > { %v1649_v41 = vmul.f32 %v1347_v39, %v1343_v29  ;;  %1348 = vrcp.f32 %v715_v40  ;;  %v1103_v29 = vld [vmem:[%s1780_s4 + $0x50] sm:$0xff] }
 0x5ad   : > { %v1095_v40 = vld [vmem:[%s1780_s4 + $0x10] sm:$0xff] }
 0x5ae   : > { %1247 = vmatmul.msk.f32.vlgmr.msra.gmra.mxu3 %vm297_vm1, %v1649_v41 }
 0x5b2   : > { %v1349_v42 = vpop.eup %1348 }
 0x5b3   : > { %v717_v43 = vmul.f32 %v1349_v42, %v1345_v32  ;;  %v1100_v32 = vld [vmem:[%s1780_s4 + $0x38] sm:$0xff]  ;;  %v1093_v42 = vld [vmem:[%s1780_s4] sm:$0xff] }
 0x5b5   : > { %1246 = vmatmul.msk.f32.vlgmr.msrb.gmra.mxu2 %vm297_vm1, %v717_v43 }
 0x5b8   : > { %v623_v50 = vpop.f32.mrf.mxu2 }
 0x5bc   : > { %v857_v47 = vpop.permute.xlu1 %856 }
 0x5bd   : > { %1253 = vmatmul.msk.f32.vlgmr.msrb.gmra.mxu3 %vm297_vm1, %v857_v47 }
 0x5be   : > { %v828_v48 = vpop.permute.xlu0 %827 }
 0x5bf   : > { %1251 = vmatmul.msk.f32.vlgmr.msra.gmra.mxu2 %vm297_vm1, %v828_v48 }
 0x631   : > { %v778_v51 = vpop.f32.mrf.mxu3 }
 0x638   : > { %v752_v52 = vpop.f32.mrf.mxu2 }
 0x640   : > { %v881_v53 = vpop.f32.mrf.mxu3 }
 0x641   : > { %v884_v54 = vmul.f32 0.35355338, %v881_v53 }
 0x642   : > { %v852_v55 = vpop.f32.mrf.mxu2 }
 0x643   : > { %v855_v56 = vmul.f32 0.35355338, %v852_v55  ;;  %v896_v57 = vsel %vm297_vm1, %v884_v54, -inf }
 0x644   : > { %897 = vmax.xlane.f32.xlu0 %v896_v57 }
 0x645   : > { %v885_v58 = vsel %vm297_vm1, %v855_v56, -inf }
 0x646   : > { %886 = vmax.xlane.f32.xlu2 %v885_v58 }
 0x65e   : > { %781 = vrot.lane.b32.xlu2 %v1555_v11, %s1432_s7 }
 0x666   : > { %1322 = vrot.lane.b32.xlu2 %v1321_v59, %s1435_s10 }
 0x66e   : > { %1014 = vrot.lane.b32.xlu2 %v1626_v15, %s1428_s25 }
 0x676   : > { %1038 = vrot.lane.b32.xlu2 %v1624_v14, %s1431_s6 }
 0x6b7   : > { %v898_v60 = vpop.xlane.xlu0 %897 }
 0x6b8   : > { %v899_v61 = vsub.f32 %v884_v54, %v898_v60 }
 0x6b9   : > { %v887_v62 = vpop.xlane.xlu2 %886 }
 0x6ba   : > { %v900_v63 = vmul.f32 1.442695, %v899_v61  ;;  %v888_v0 = vsub.f32 %v855_v56, %v887_v62 }
 0x6bc   : > { %1350 = vpow2.f32 %v900_v63  ;;  %v889_v1 = vmul.f32 1.442695, %v888_v0 }
 0x6be   : > { %1352 = vpow2.f32 %v889_v1 }
 0x6c1   : > { %v782_v2 = vpop.permute.xlu2 %781 }
 0x6c2   : > { %v1351_v3 = vpop.eup %1350  ;;  %799 = vmatpush.msra.mxu0 %v782_v2 }
 0x6c3   : > { %1248 = vmatmul.msk.f32.vlgmr.msra.gmra.mxu0 %vm297_vm1, %v717_v43  ;;  %v902_v10 = vsel %vm297_vm1, %v1351_v3, 0.0 }
 0x6c4   : > { %v1353_v4 = vpop.eup %1352  ;;  %903 = vadd.xlane.f32.xlu0 %v902_v10 }
 0x6c5   : > { %v891_v5 = vsel %vm297_vm1, %v1353_v4, 0.0 }
 0x6c6   : > { %892 = vadd.xlane.f32.xlu1 %v891_v5 }
 0x6c9   : > { %v1323_v6 = vpop.permute.xlu2 %1322 }
 0x6ca   : > { %v1325_v7 = vunpack.i.h.bf16 %v1323_v6  ;;  %v1324_v17 = vunpack.i.l.bf16 %v1323_v6 }
 0x6cc   : > { %1000 = vmatpush.msra.mxu3 %v1325_v7 }
 0x6d1   : > { %v1015_v38 = vpop.permute.xlu2 %1014 }
 0x6d8   : > { %1317 = vrot.lane.b32.xlu0 %v1321_v59, %s1436_s11 }
 0x6d9   : > { %v1039_v47 = vpop.permute.xlu2 %1038 }
 0x6df   : > { %804 = vrot.lane.b32.xlu1 %v1555_v11, %s1433_s8 }
 0x6e0   : > { %1006 = vrot.lane.b32.xlu0 %v1593_v45, %s1435_s10 }
 0x6e7   : > { %1010 = vrot.lane.b32.xlu1 %v1628_v16, %s1433_s8 }
 0x6e8   : > { %1018 = vrot.lane.b32.xlu0 %v752_v52, %s1422_s13  ;;  %s1221_s13 = sshll.u32 %s226_s12, 3 }
 0x6ef   : > { %1022 = vrot.lane.b32.xlu1 %v778_v51, %s1436_s11 }
 0x6f0   : > { %1042 = vrot.lane.b32.xlu0 %v623_v50, %s1429_s26 }
 0x6f7   : > { %1034 = vrot.lane.b32.xlu1 %v1595_v46, %s1424_s14  ;;  %s1259_s14 = sshll.u32 %s1488_s22, 3 }
 0x6f8   : > { %s1141_s26 = scalar_lea.hbm %s1781_s5, %s1259_s14 }
 0x6ff   : > { %1046 = vrot.lane.b32.xlu1 %v646_v49, %s1425_s16 }
 0x737   : > { %v904_v8 = vpop.xlane.xlu0 %903 }
 0x738   : > { %1354 = vrcp.f32 %v904_v8 }
 0x739   : > { %v893_v11 = vpop.xlane.xlu1 %892 }
 0x73a   : > { %1356 = vrcp.f32 %v893_v11 }
 0x73e   : > { %v1355_v9 = vpop.eup %1354 }
 0x73f   : > { %v906_v12 = vmul.f32 %v1355_v9, %v1351_v3 }
 0x740   : > { %v1357_v45 = vpop.eup %1356  ;;  %v801_v18 = vpop.f32.mrf.mxu0 }
 0x741   : > { %1257 = vmatmul.msk.f32.vlgmr.msra.gmra.mxu3 %vm297_vm1, %v906_v12  ;;  %v895_v16 = vmul.f32 %v1357_v45, %v1353_v4 }
 0x74a   : > { %v1318_v13 = vpop.permute.xlu0 %1317 }
 0x74b   : > { %v1320_v14 = vunpack.i.h.bf16 %v1318_v13  ;;  %v1319_v15 = vunpack.i.l.bf16 %v1318_v13 }
 0x74d   : > { %928 = vmatpush.msrb.mxu0 %v1319_v15  ;;  %977 = vmatpush.msrb.mxu2 %v1320_v14 }
 0x74e   : > { %1254 = vmatmul.msk.f32.vlgmr.msrb.gmra.mxu0 %vm297_vm1, %v895_v16  ;;  %1256 = vmatmul.msk.f32.vlgmr.msrb.gmra.mxu2 %vm297_vm1, %v895_v16 }
 0x74f   : > { %1109 = vmatpush.msra.mxu0 %v1108_v24 }
 0x751   : > { %v805_v46 = vpop.permute.xlu1 %804  ;;  %1110 = vmatpush.msra.mxu0 %v1107_v25 }
 0x752   : > { %822 = vmatpush.msrb.mxu1 %v805_v46  ;;  %v1007_v39 = vpop.permute.xlu0 %1006 }
 0x753   : > { %1249 = vmatmul.msk.f32.vlgmr.msrb.gmra.mxu1 %vm297_vm1, %v1649_v41  ;;  %1111 = vmatpush.msra.mxu0 %v1106_v26  ;;  %v1094_v41 = vld [vmem:[%s1780_s4 + $0x8] sm:$0xff]  ;;  %v1065_v50 = vsel %vm297_vm1, %v1591_v44, %v1007_v39 }
 0x754   : > { %954 = vmatpush.msra.mxu1 %v1324_v17 }
 0x755   : > { %1112 = vmatpush.msra.mxu0 %v1105_v27 }
 0x757   : > { %1113 = vmatpush.msra.mxu0 %v1104_v28 }
 0x759   : > { %1114 = vmatpush.msra.mxu0 %v1103_v29  ;;  %v1011_v35 = vpop.permute.xlu1 %1010 }
 0x75a   : > { %v1019_v48 = vpop.permute.xlu0 %1018  ;;  %v1067_v52 = vsel %vm1066_vm2, %v1065_v50, %v1011_v35 }
 0x75b   : > { %1255 = vmatmul.msk.f32.vlgmr.msra.gmra.mxu1 %vm297_vm1, %v906_v12  ;;  %1115 = vmatpush.msra.mxu0 %v1102_v30  ;;  %v1069_v54 = vsel %vm1068_vm3, %v1067_v52, %v1015_v38 }
 0x75c   : > { %v1070_v55 = vsel %vm243_vm0, %v1069_v54, %v1019_v48 }
 0x75d   : > { %1116 = vmatpush.msra.mxu0 %v1101_v31 }
 0x75f   : > { %1117 = vmatpush.msra.mxu0 %v1100_v32 }
 0x761   : > { %1118 = vmatpush.msra.mxu0 %v1099_v33  ;;  %v1023_v43 = vpop.permute.xlu1 %1022 }
 0x762   : > { %v1043_v53 = vpop.permute.xlu0 %1042  ;;  %v1072_v56 = vsel %vm1071_vm4, %v1070_v55, %v1023_v43 }
 0x763   : > { %1119 = vmatpush.msra.mxu0 %v1098_v34 }
 0x765   : > { %1120 = vmatpush.msra.mxu0 %v1097_v36 }
 0x767   : > { %1121 = vmatpush.msra.mxu0 %v1096_v37 }
 0x769   : > { %1122 = vmatpush.msra.mxu0 %v1095_v40  ;;  %v1035_v51 = vpop.permute.xlu1 %1034 }
 0x76b   : > { %1123 = vmatpush.msra.mxu0 %v1094_v41 }
 0x76d   : > { %1124 = vmatpush.msra.mxu0 %v1093_v42 }
 0x771   : > { %v1047_v60 = vpop.permute.xlu1 %1046 }
 0x7c4   : > { %v1002_v23 = vpop.f32.mrf.mxu3 }
 0x7cb   : > { %v930_v19 = vpop.f32.mrf.mxu0 }
 0x7cc   : > { %1026 = vrot.lane.b32.xlu2 %v930_v19, %s1432_s7 }
 0x7d0   : > { %v824_v20 = vpop.f32.mrf.mxu1 }
 0x7d1   : > { %v979_v21 = vpop.f32.mrf.mxu2 }
 0x7d2   : > { %1058 = vrot.lane.b32.xlu1 %v979_v21, %s1430_s30  ;;  %s1131_s30 = scalar_lea.sflag [#allocation3], %s226_s12 }
 0x7d4   : > { %1050 = vrot.lane.b32.xlu2 %v801_v18, %s1423_s15  ;;  %s228_s15 = scalar_lea.vmem [#allocation2], %s1221_s13 }
 0x7d8   : > { %v956_v22 = vpop.f32.mrf.mxu1 }
 0x7d9   : > { %1030 = vrot.lane.b32.xlu0 %v956_v22, %s1427_s23  ;;  %s1143_s23 = sshll.u32 %s228_s15, 4  ;;  %s1144_s23 = int_to_ptr.vmem [resolvable:$true] %s1143_s23 }
 0x7dc   : > { %1062 = vrot.lane.b32.xlu2 %v1002_v23, %s1426_s17  ;;  %s1145_s17 = sshll.u32 %s1141_s26, 4  ;;  %s1146_s17 = int_to_ptr.hbm [resolvable:$true] %s1145_s17 }
 0x7dd   : > { %s1372_s6 = sshra.s32 %s1146_s17, 4  ;;  %s1373_s6 = int_to_ptr.hbm [resolvable:$true] %s1372_s6 }
 0x7de   : > { %s1374_s7 = scalar_lea.hbm %s1373_s6, 8  ;;  %p1379_p0 = scmp.lt.s32.totalorder %s1373_s6, %s1781_s5 }
 0x7df   : > { %p1375_p11 = scmp.ne.s32.totalorder %s1373_s6, %s1374_s7 }
 0x7e1   : > { %1054 = vrot.lane.b32.xlu0 %v824_v20, %s1434_s9  ;;  %p1376_p12 = pnand %p1375_p11, %p1505_p5  ;;  %s1378_s9 = scalar_lea.hbm %s1781_s5, 16 }
 0x7e2   : > { %p1380_p1 = scmp.lt.s32.totalorder %s1378_s9, %s1374_s7 }
 0x7e3   : > { %p1377_p13 = pneg %p1376_p12 }
 0x7e4   : > { %p1381_p2 = por %p1380_p1, %p1379_p0 }
 0x7e6   : > { %p1382_p3 = pnand %p1381_p2, %p1377_p13 }
 0x826   : > { %v1027_v49 = vpop.permute.xlu2 %1026 }
 0x827   : > { %v1074_v57 = vsel %vm1073_vm5, %v1072_v56, %v1027_v49 }
 0x82e   : > { %v1051_v58 = vpop.permute.xlu2 %1050 }
 0x836   : > { %v1063_v4 = vpop.permute.xlu2 %1062 }
 0x844   : > { %v1059_v3 = vpop.permute.xlu1 %1058 }
 0x84b   : > { %v1031_v59 = vpop.permute.xlu0 %1030 }
 0x84c   : > { %v1076_v61 = vsel %vm1075_vm6, %v1074_v57, %v1031_v59 }
 0x84d   : > { %v1078_v44 = vsel %vm1077_vm7, %v1076_v61, %v1035_v51 }
 0x84e   : > { %v1080_v62 = vsel %vm1079_vm8, %v1078_v44, %v1039_v47 }
 0x84f   : > { %v1082_v63 = vsel %vm1081_vm9, %v1080_v62, %v1043_v53 }
 0x850   : > { %v1084_v0 = vsel %vm1083_vm10, %v1082_v63, %v1047_v60 }
 0x851   : > { %v1086_v2 = vsel %vm1085_vm11, %v1084_v0, %v1051_v58 }
 0x853   : > { %v1055_v1 = vpop.permute.xlu0 %1054 }
 0x854   : > { %v1088_v10 = vsel %vm1087_vm12, %v1086_v2, %v1055_v1 }
 0x855   : > { %v1090_v5 = vsel %vm1089_vm13, %v1088_v10, %v1059_v3 }
 0x856   : > { %v1092_v6 = vsel %vm1091_vm14, %v1090_v5, %v1063_v4 }
 0x857   : > { %1125 = vmatmul.f32.vlgmr.msra.gmra.mxu0 %v1092_v6 }
 0x8d4   : > { %v1126_v7 = vpop.f32.mrf.mxu0 }
 0x8d5   : > { %1129 = vst.msk [vmem:[%s228_s15] sm:$0xff] %vm1077_vm7, %v1126_v7 }
 0x8d6   : > { %1385 = shalt.err (!%p1382_p3)
}
 0x8d7   : > { %1262 = dma.vmem_to_hbm [thread:$0]  (%p1505_p5), %s1144_s23, 128, %s1146_s17, %s1131_s30  }
 0x8d8 PF: > { %p1268_p4 = scmp.ge.s32.totalorder %s1420_s21, 2  ;;  %s1157_s12 = sand.u32 1, %s1408_s18  }
 0x8d9   : > { %s1158_s13 = scalar_lea.sflag [#allocation3], %s1157_s12 }
 0x8da   : > { %p1265_p7 = pnand %p1268_p4, %p1509_p6 }
 0x8dc   : > { %p1266_p8 = pneg %p1265_p7 }
 0x8de   : > { %1403 = dma.done.wait (%p1266_p8), %s1158_s13, 128  }
 0x8df   : > { %1405 = vsyncadd (%p1266_p8), %s1158_s13, 4294967168  ;;  %p15_p9 = scmp.ge.s32.totalorder %s1492_s24, 4   ;;  %s1784_s18 = smov %s1412_s19 }
 0x8e0   : > { %s1785_s19 = smov %s1416_s20  ;;  %s1786_s20 = smov %s1503_s27 }
 0x8e1   : > { %s1787_s21 = smov %s1492_s24  ;;  %17 = sbr.rel (!%p15_p9) target bundleno = 3 (0x3), region = 78 }
 0x8e6   :  { %1164 = vsyncpa [#allocation3], 1 }
 0x8e7   :  { %1166 = vsyncpa [#allocation3 + $0x1], 1 }

</bundles_post_ra>
